<compile_context>
chip_gen: v7x
topology: tpu7x:2x2x1
jax: 0.10.0
libtpu: 0.0.40
codegen_flags: <defaults>
</compile_context>

<pallas_src>
import math

import jax
import jax.numpy as jnp
from jax import lax
from jax.experimental import pallas as pl
from jax.experimental.pallas import tpu as pltpu


def _concave(x):
    # torch.sqrt(torch.clamp(x, min=1e-06))
    return jnp.sqrt(jnp.maximum(x, 1e-6))


def dsf_deepset_kernel(x_ref, wphi_ref, w1_ref, w2_ref, wrow_ref, o_ref):
    """One batch tile.

    x_ref   : (TB*N, Din)   set elements (batch-flattened view)
    wphi_ref: (Din, E)      phi weight (pre-transposed)
    w1_ref  : (E, H1)       DSF layer 1 weight (clamped >= 0 in wrapper)
    w2_ref  : (H1, H2)      DSF layer 2 weight (clamped >= 0 in wrapper)
    wrow_ref: (1, H2)       output-layer weight row (clamped >= 0 in wrapper)
    o_ref   : (1, 1, TB)    per-set scalar outputs, lane-dense
    """
    tb = o_ref.shape[-1]
    n = x_ref.shape[0] // tb

    # phi: Linear(input_dim, embed_dim, bias=False) + ReLU; M = TB*N rows keep
    # the MXU busy despite the small contraction dim; f32 accumulation.
    h = jnp.maximum(
        jnp.dot(x_ref[...], wphi_ref[...], preferred_element_type=jnp.float32),
        0.0,
    )                                                       # (TB*N, E) f32

    # Permutation-invariant sum over the set dimension.  The wrapper keeps
    # N % 8 == 0, so this reshape is a pure sublane-tile relabel (no relayout).
    s = jnp.sum(h.reshape(tb, n, h.shape[-1]), axis=1)      # (TB, E)

    # DSF layers (weights already clamped >= 0) + concave activation.
    z = _concave(jnp.dot(s, w1_ref[...],
                         preferred_element_type=jnp.float32))   # (TB, H1)
    z = _concave(jnp.dot(z, w2_ref[...],
                         preferred_element_type=jnp.float32))   # (TB, H2)

    # Output layer (out_features == 1): contract H2 against the weight row so
    # the result lands lane-dense as (1, TB) -- avoids a (TB, 1) column of
    # masked partial stores.
    out = lax.dot_general(wrow_ref[...], z, (((1,), (1,)), ((), ())),
                          preferred_element_type=jnp.float32)   # (1, TB)
    o_ref[...] = _concave(out)[None].astype(o_ref.dtype)        # (1, 1, TB)


def dsf_deepset_forward(x, params, *, max_rows_per_tile=None):
    """x: (N, Din) or (B, N, Din), f32 or bf16 (caller-supplied bf16 halves
    the dominant HBM stream).  params: (wphi, w1, w2, wout), each weight
    stored as (in_features, out_features).  Returns (B, 1) float32."""
    if x.ndim == 2:
        x = x[None]
    B, N, Din = x.shape
    wphi, w1, w2, wout = params
    E, H1, H2 = wphi.shape[1], w1.shape[1], w2.shape[1]
    x_itemsize = jnp.dtype(x.dtype).itemsize

    # Keep the set dim a multiple of 8 so the in-kernel (TB*N,E)->(TB,N,E)
    # reshape stays a sublane relabel.  Zero rows die in the ReLU, so the set
    # sum is unchanged.  (No-op -- and no extra HBM pass -- when N % 8 == 0.)
    if N % 8 != 0:
        pad_n = 8 - N % 8
        x = jnp.pad(x, ((0, 0), (0, pad_n), (0, 0)))
        N += pad_n

    # ---- tile size from a VMEM byte budget --------------------------------
    try:
        vmem_cap = int(pltpu.get_tpu_info().vmem_capacity_bytes)
    except Exception:
        vmem_cap = 64 * 1024 * 1024          # v7x has the smallest VMEM
    vmem_limit = max(32 << 20, min(vmem_cap * 3 // 4, 96 << 20))
    weight_bytes = 4 * (Din * E + E * H1 + H1 * H2 + H2)
    data_budget = max(4 << 20, vmem_limit - 2 * weight_bytes - (6 << 20))
    # Per x row: lane-padded (Din -> 128 lanes) double-buffered input, plus
    # the f32 phi activation (counted twice as slack for the set-sum temp).
    per_row = 2 * 128 * x_itemsize + 2 * E * 4
    cap_rows = 32768 if x_itemsize <= 2 else 16384
    max_rows = min(data_budget // per_row, cap_rows)
    if max_rows_per_tile is not None:
        max_rows = min(max_rows, max_rows_per_tile)
    max_rows = max(N, int(max_rows))

    TB = max(1, min(B, max_rows // N))
    # Ensure >= 2 tiles when a single tile would cover everything but there is
    # enough work to amortize the extra grid step (feeds both v7x TensorCores
    # through the "parallel" axis; harmless on v5e/v6e).
    if TB >= B and B >= 2 and B * N >= 8192:
        TB = (B + 1) // 2
    if TB < B:
        # Keep TB*N sublane-aligned for x's dtype packing (8 f32 / 16 bf16).
        sublane = max(8, 32 // x_itemsize)
        step = sublane // math.gcd(N, sublane)
        TB = max(step, (TB // step) * step)
    TB = min(TB, B)
    num_tiles = pl.cdiv(B, TB)

    # ---- parameter prep (tiny, one-time XLA ops) ---------------------------
    wphi_c = wphi.astype(x.dtype)                        # phi matmul in x dtype
    w1_c = jnp.maximum(w1, 0.0).astype(jnp.float32)      # weight.clamp_(min=0)
    w2_c = jnp.maximum(w2, 0.0).astype(jnp.float32)
    wrow_c = jnp.maximum(wout, 0.0).reshape(1, H2).astype(jnp.float32)

    # Free view: no pad/cast precedes it, so this is layout plumbing only.
    x2 = x.reshape(B * N, Din)

    cost = pl.CostEstimate(
        flops=2 * B * N * Din * E + 2 * B * (E * H1 + H1 * H2 + H2),
        transcendentals=B * (H1 + H2 + 1),
        bytes_accessed=B * N * Din * x_itemsize + weight_bytes + 4 * B,
    )

    out = pl.pallas_call(
        dsf_deepset_kernel,
        out_shape=jax.ShapeDtypeStruct((num_tiles, 1, TB), jnp.float32),
        grid=(num_tiles,),
        in_specs=[
            # x rows tiled over the batch grid -> automatic double-buffering.
            # Final partial tile uses Pallas edge-block handling; its garbage
            # rows belong only to whole sets that are sliced off below.
            pl.BlockSpec((TB * N, Din), lambda i: (i, 0)),
            # Weights: constant index_map -> stay resident in VMEM.
            pl.BlockSpec(wphi_c.shape, lambda i: (0, 0)),
            pl.BlockSpec(w1_c.shape, lambda i: (0, 0)),
            pl.BlockSpec(w2_c.shape, lambda i: (0, 0)),
            pl.BlockSpec(wrow_c.shape, lambda i: (0, 0)),
        ],
        # Lane-dense output block (scalar per set spread across lanes).
        out_specs=pl.BlockSpec((1, 1, TB), lambda i: (i, 0, 0)),
        compiler_params=pltpu.CompilerParams(
            dimension_semantics=("parallel",),
            vmem_limit_bytes=int(vmem_limit),
        ),
        cost_estimate=cost,
    )(x2, wphi_c, w1_c, w2_c, wrow_c)

    return out.reshape(num_tiles * TB)[:B].reshape(B, 1)


def init_params(key, input_dim=15, embed_dim=128, hidden_dims=(64, 32)):
    """Deterministic synthetic parameters mirroring DSFDeepSet.__init__.
    Weights are returned pre-transposed to (in_features, out_features)."""
    k_phi, k1, k2, k_out = jax.random.split(key, 4)

    # phi Linear: torch default init uniform(-1/sqrt(fan_in), 1/sqrt(fan_in)).
    bound = 1.0 / jnp.sqrt(float(input_dim))
    wphi = jax.random.uniform(
        k_phi, (input_dim, embed_dim), jnp.float32, -bound, bound)

    dims = [embed_dim] + list(hidden_dims)
    # dsf layers + output layer: uniform(0.01, 0.1).
    w1 = jax.random.uniform(k1, (dims[0], dims[1]), jnp.float32, 0.01, 0.1)
    w2 = jax.random.uniform(k2, (dims[1], dims[2]), jnp.float32, 0.01, 0.1)
    wout = jax.random.uniform(k_out, (dims[2], 1), jnp.float32, 0.01, 0.1)
    return wphi, w1, w2, wout


def reference_forward(x, params):
    """Pure-JAX reference matching the PyTorch forward semantics."""
    wphi, w1, w2, wout = params
    if x.ndim == 2:
        x = x[None]
    x = x.astype(jnp.float32)
    h = jnp.maximum(jnp.einsum("bnd,de->bne", x, wphi), 0.0)
    s = jnp.sum(h, axis=1)
    z = _concave(s @ jnp.maximum(w1, 0.0))
    z = _concave(z @ jnp.maximum(w2, 0.0))
    return _concave(z @ jnp.maximum(wout, 0.0))


if __name__ == "__main__":
    key = jax.random.PRNGKey(0)
    k_x, k_xb, k_p = jax.random.split(key, 3)

    D_in, E, H = 15, 128, (64, 32)
    params = init_params(k_p, input_dim=D_in, embed_dim=E, hidden_dims=H)

    # Small shape consistent with the module: B=2 sets of N=8 elements.
    B, N = 2, 8
    x = jax.random.normal(k_x, (B, N, D_in), dtype=jnp.float32)
    out = jax.block_until_ready(dsf_deepset_forward(x, params))
    ref = reference_forward(x, params)
    assert out.shape == (B, 1)
    assert jnp.allclose(out, ref, rtol=1e-5, atol=1e-5), (out, ref)

    # Larger batch: single big tile path.
    Bb = 300
    xb = jax.random.normal(k_xb, (Bb, N, D_in), dtype=jnp.float32)
    refb = reference_forward(xb, params)
    outb = jax.block_until_ready(dsf_deepset_forward(xb, params))
    assert outb.shape == (Bb, 1)
    assert jnp.allclose(outb, refb, rtol=1e-5, atol=1e-5)

    # Forced multi-tile path: exercises the pipelined grid and the final
    # partial (edge-handled) batch tile without any wrapper-side padding.
    outb_tiled = jax.block_until_ready(
        dsf_deepset_forward(xb, params, max_rows_per_tile=512))
    assert outb_tiled.shape == (Bb, 1)
    assert jnp.allclose(outb_tiled, refb, rtol=1e-5, atol=1e-5)

    # Caller-supplied bf16 x: halves the dominant HBM stream; only the phi
    # matmul loses precision (DSF tail stays f32) -> loose tolerance.
    outb16 = jax.block_until_ready(
        dsf_deepset_forward(xb.astype(jnp.bfloat16), params))
    assert outb16.shape == (Bb, 1)
    assert jnp.allclose(outb16, refb, rtol=5e-2, atol=5e-2)

    print("KERNEL_OK")
</pallas_src>

<mosaic_0001>
module attributes {stable_mosaic.version = 11 : i64} {
  func.func @dsf_deepset_kernel(%arg0: i32, %arg1: memref<16x15xf32, #tpu.memory_space<vmem>>, %arg2: memref<15x128xf32, #tpu.memory_space<vmem>>, %arg3: memref<128x64xf32, #tpu.memory_space<vmem>>, %arg4: memref<64x32xf32, #tpu.memory_space<vmem>>, %arg5: memref<1x32xf32, #tpu.memory_space<vmem>>, %arg6: memref<1x1x2xf32, #tpu.memory_space<vmem>>) attributes {dimension_semantics = [#tpu.dimension_semantics<parallel>], iteration_bounds = array<i64: 1>, scalar_prefetch = 0 : i64, scratch_operands = 0 : i64, tpu.core_type = #tpu.core_type<tc>, window_params = [{transform_indices = @transform_0, window_bounds = array<i64: 16, 15>}, {pipeline_mode = #tpu.pipeline_mode<synchronous>, transform_indices = @transform_1, window_bounds = array<i64: 15, 128>}, {pipeline_mode = #tpu.pipeline_mode<synchronous>, transform_indices = @transform_2, window_bounds = array<i64: 128, 64>}, {pipeline_mode = #tpu.pipeline_mode<synchronous>, transform_indices = @transform_3, window_bounds = array<i64: 64, 32>}, {pipeline_mode = #tpu.pipeline_mode<synchronous>, transform_indices = @transform_4, window_bounds = array<i64: 1, 32>}, {transform_indices = @transform_5, window_bounds = array<i64: 1, 1, 2>}]} {
    %c0 = arith.constant 0 : index
    %c0_0 = arith.constant 0 : index
    %0 = vector.load %arg1[%c0, %c0_0] : memref<16x15xf32, #tpu.memory_space<vmem>>, vector<16x15xf32>
    %c0_1 = arith.constant 0 : index
    %c0_2 = arith.constant 0 : index
    %1 = vector.load %arg2[%c0_1, %c0_2] : memref<15x128xf32, #tpu.memory_space<vmem>>, vector<15x128xf32>
    %cst = arith.constant dense<0.000000e+00> : vector<16x128xf32>
    %2 = tpu.matmul %0, %1, %cst {dimension_numbers = #tpu.dot_dimension_numbers<[1], [0], [0], [1], [0, 0, 1, 1], [], []>} : vector<16x15xf32>, vector<15x128xf32>, vector<16x128xf32> -> vector<16x128xf32>
    %cst_3 = arith.constant 0.000000e+00 : f32
    %3 = vector.broadcast %cst_3 : f32 to vector<16x128xf32>
    %4 = arith.maximumf %2, %3 : vector<16x128xf32>
    %5 = vector.shape_cast %4 : vector<16x128xf32> to vector<2x8x128xf32>
    %cst_4 = arith.constant dense<0.000000e+00> : vector<2x128xf32>
    %6 = vector.multi_reduction <add>, %5, %cst_4 [1] : vector<2x8x128xf32> to vector<2x128xf32>
    %c0_5 = arith.constant 0 : index
    %c0_6 = arith.constant 0 : index
    %7 = vector.load %arg3[%c0_5, %c0_6] : memref<128x64xf32, #tpu.memory_space<vmem>>, vector<128x64xf32>
    %cst_7 = arith.constant dense<0.000000e+00> : vector<2x64xf32>
    %8 = tpu.matmul %6, %7, %cst_7 {dimension_numbers = #tpu.dot_dimension_numbers<[1], [0], [0], [1], [0, 0, 1, 1], [], []>} : vector<2x128xf32>, vector<128x64xf32>, vector<2x64xf32> -> vector<2x64xf32>
    %cst_8 = arith.constant 9.99999997E-7 : f32
    %9 = vector.broadcast %cst_8 : f32 to vector<2x64xf32>
    %10 = arith.maximumf %8, %9 : vector<2x64xf32>
    %11 = math.sqrt %10 : vector<2x64xf32>
    %c0_9 = arith.constant 0 : index
    %c0_10 = arith.constant 0 : index
    %12 = vector.load %arg4[%c0_9, %c0_10] : memref<64x32xf32, #tpu.memory_space<vmem>>, vector<64x32xf32>
    %cst_11 = arith.constant dense<0.000000e+00> : vector<2x32xf32>
    %13 = tpu.matmul %11, %12, %cst_11 {dimension_numbers = #tpu.dot_dimension_numbers<[1], [0], [0], [1], [0, 0, 1, 1], [], []>} : vector<2x64xf32>, vector<64x32xf32>, vector<2x32xf32> -> vector<2x32xf32>
    %cst_12 = arith.constant 9.99999997E-7 : f32
    %14 = vector.broadcast %cst_12 : f32 to vector<2x32xf32>
    %15 = arith.maximumf %13, %14 : vector<2x32xf32>
    %16 = math.sqrt %15 : vector<2x32xf32>
    %c0_13 = arith.constant 0 : index
    %c0_14 = arith.constant 0 : index
    %17 = vector.load %arg5[%c0_13, %c0_14] : memref<1x32xf32, #tpu.memory_space<vmem>>, vector<1x32xf32>
    %cst_15 = arith.constant dense<0.000000e+00> : vector<1x2xf32>
    %18 = tpu.matmul %17, %16, %cst_15 {dimension_numbers = #tpu.dot_dimension_numbers<[1], [1], [0], [0], [0, 0, 1, 0], [], []>} : vector<1x32xf32>, vector<2x32xf32>, vector<1x2xf32> -> vector<1x2xf32>
    %cst_16 = arith.constant 9.99999997E-7 : f32
    %19 = vector.broadcast %cst_16 : f32 to vector<1x2xf32>
    %20 = arith.maximumf %18, %19 : vector<1x2xf32>
    %21 = math.sqrt %20 : vector<1x2xf32>
    %22 = vector.shape_cast %21 : vector<1x2xf32> to vector<1x1x2xf32>
    %c0_17 = arith.constant 0 : index
    %c0_18 = arith.constant 0 : index
    %c0_19 = arith.constant 0 : index
    %23 = vector.load %arg6[%c0_17, %c0_18, %c0_19] : memref<1x1x2xf32, #tpu.memory_space<vmem>>, vector<1x1x2xf32>
    tpu.vector_store %arg6[%c0_17, %c0_18, %c0_19], %22 {strides = array<i32>} : memref<1x1x2xf32, #tpu.memory_space<vmem>>, vector<1x1x2xf32>,
    return
  }
  func.func @transform_0(%arg0: i32) -> (i32, i32) {
    %c0_i32 = arith.constant 0 : i32
    %c0_i32_0 = arith.constant 0 : i32
    return %arg0, %c0_i32 : i32, i32
  }
  func.func @transform_1(%arg0: i32) -> (i32, i32) {
    %c0_i32 = arith.constant 0 : i32
    %c0_i32_0 = arith.constant 0 : i32
    %c0_i32_1 = arith.constant 0 : i32
    return %c0_i32, %c0_i32_0 : i32, i32
  }
  func.func @transform_2(%arg0: i32) -> (i32, i32) {
    %c0_i32 = arith.constant 0 : i32
    %c0_i32_0 = arith.constant 0 : i32
    %c0_i32_1 = arith.constant 0 : i32
    return %c0_i32, %c0_i32_0 : i32, i32
  }
  func.func @transform_3(%arg0: i32) -> (i32, i32) {
    %c0_i32 = arith.constant 0 : i32
    %c0_i32_0 = arith.constant 0 : i32
    %c0_i32_1 = arith.constant 0 : i32
    return %c0_i32, %c0_i32_0 : i32, i32
  }
  func.func @transform_4(%arg0: i32) -> (i32, i32) {
    %c0_i32 = arith.constant 0 : i32
    %c0_i32_0 = arith.constant 0 : i32
    %c0_i32_1 = arith.constant 0 : i32
    return %c0_i32, %c0_i32_0 : i32, i32
  }
  func.func @transform_5(%arg0: i32) -> (i32, i32, i32) {
    %c0_i32 = arith.constant 0 : i32
    %c0_i32_0 = arith.constant 0 : i32
    %c0_i32_1 = arith.constant 0 : i32
    return %arg0, %c0_i32, %c0_i32_0 : i32, i32, i32
  }
}

</mosaic_0001>

<bundles_post_ra>
// kernel: tpu_custom_call.1
= control target key start
LH: loop header
LB: loop body
LE: loop exit
PB: predicated region body
PF: predicated region fallthrough
CT: control target
= control target key end

     0   :  { %vm32_vm0 = vcmask 1046528   ;;  %vm597_vm1 = vmmov 1   ;;  %vm25_vm3 = vcmask 121856   ;;  %v598_v5 = vmov 0.0|0.0   ;;  %s748_s0 = inlined_call_operand.vmem [shape: f32[16,15], index: 0, kind: input, shape index: {}]   ;;  %s749_s1 = inlined_call_operand.vmem [shape: f32[15,128], index: 1, kind: input, shape index: {}]   ;;  %s750_s2 = inlined_call_operand.vmem [shape: f32[128,64], index: 2, kind: input, shape index: {}]   ;;  %s751_s3 = inlined_call_operand.vmem [shape: f32[64,32], index: 3, kind: input, shape index: {}]   ;;  %s752_s4 = inlined_call_operand.vmem [shape: f32[1,32], index: 4, kind: input, shape index: {}]   ;;  %s753_s5 = inlined_call_operand.hbm [shape: f32[1,1,2], index: 5, kind: output, shape index: {}]  }
   0x1   :  { %v23_v0 = vld [vmem:[%s749_s1] sm:$0xff]  ;;  %v24_v1 = vld [vmem:[%s749_s1 + $0x8] sm:$0x7f]  ;;  %vm521_vm2 = vmpackc.low %vm32_vm0, %vm597_vm1  ;;  %526 = vmatprep.subr.bf16.mxu1 %v598_v5 }
   0x2   :  { %v21_v2 = vld [vmem:[%s748_s0] sm:$0xff]  ;;  %v520_v3 = vpack.c.bf16 %v24_v1, %v23_v0  ;;  %v126_v6 = vld [vmem:[%s750_s2 + $0x8] sm:$0xff]  ;;  %v127_v7 = vld [vmem:[%s750_s2 + $0x10] sm:$0xff] }
   0x3   :  { %v125_v4 = vld [vmem:[%s750_s2] sm:$0xff]  ;;  %458 = vmatprep.mubr.msk.f32.mxu0 %vm25_vm3, %v21_v2  ;;  %v128_v8 = vld [vmem:[%s750_s2 + $0x18] sm:$0xff]  ;;  %v22_v10 = vld [vmem:[%s748_s0 + $0x8] sm:$0xff] }
   0x4   :  { %522 = vmatprep.subr.msk.bf16.mxu0 %vm521_vm2, %v520_v3  ;;  %v527_v9 = vpack.c.bf16 %v126_v6, %v125_v4 }
   0x5   :  { %525 = vmatpush3.bf16.msk.msra.mxu0 %vm521_vm2, %v520_v3 }
   0x6   :  { %10 = vsyncpa [#allocation3], 0  ;;  %528 = vmatpush3.bf16.msra.mxu1 %v527_v9  ;;  %v530_v11 = vpack.c.bf16 %v128_v8, %v127_v7  ;;  %550 = vmatprep.subr.bf16.mxu0 %v598_v5  ;;  %v129_v12 = vld [vmem:[%s750_s2 + $0x20] sm:$0xff]  ;;  %v130_v13 = vld [vmem:[%s750_s2 + $0x28] sm:$0xff]  ;;  %vm599_vm4 = vmmov 0   ;;  %v600_v30 = vmov 0.0  }
   0x7   :  { %529 = vmatprep.subr.bf16.mxu1 %v598_v5  ;;  %v533_v14 = vpack.c.bf16 %v130_v13, %v129_v12  ;;  %v131_v15 = vld [vmem:[%s750_s2 + $0x30] sm:$0xff]  ;;  %v132_v16 = vld [vmem:[%s750_s2 + $0x38] sm:$0xff]  ;;  %v133_v18 = vld [vmem:[%s750_s2 + $0x40] sm:$0xff]  ;;  %493 = vmatprep.mubr.msk.f32.mxu1 %vm599_vm4, %v600_v30  ;;  %vm143_vm5 = vcmask 1041409   ;;  %vm232_vm7 = vcmask 523264   ;;  %vm315_vm10 = vcmask 261120  }
   0x8   :  { %459 = vmatmul.mubr.msk.f32.vlgmr.msra.gmra.mrb[0].mxu0 %vm25_vm3, %v22_v10  ;;  %v536_v17 = vpack.c.bf16 %v132_v16, %v131_v15  ;;  %v134_v19 = vld [vmem:[%s750_s2 + $0x48] sm:$0xff]  ;;  %v135_v21 = vld [vmem:[%s750_s2 + $0x50] sm:$0xff]  ;;  %v136_v22 = vld [vmem:[%s750_s2 + $0x58] sm:$0xff]  ;;  %s601_s20 = smov [#allocation2]   ;;  %vm400_vm13 = vcmask 8192  }
   0x9   :  { %v539_v20 = vpack.c.bf16 %v134_v19, %v133_v18  ;;  %v542_v23 = vpack.c.bf16 %v136_v22, %v135_v21  ;;  %v137_v24 = vld [vmem:[%s750_s2 + $0x60] sm:$0xff]  ;;  %v138_v25 = vld [vmem:[%s750_s2 + $0x68] sm:$0xff]  ;;  %v139_v27 = vld [vmem:[%s750_s2 + $0x70] sm:$0xff]  ;;  %512 = vmatprep.mubr.msk.f32.mxu0 %vm599_vm4, %v600_v30  ;;  %s408_s21 = sshll.u32 %s601_s20, 4  ;;  %s409_s21 = int_to_ptr.vmem [resolvable:$true] %s408_s21 }
   0xa   :  { %531 = vmatpush3.bf16.msra.mxu1 %v530_v11  ;;  %v545_v26 = vpack.c.bf16 %v138_v25, %v137_v24  ;;  %v140_v28 = vld [vmem:[%s750_s2 + $0x78] sm:$0xff]  ;;  %v224_v48 = vld [vmem:[%s751_s3] sm:$0xff]  ;;  %v225_v49 = vld [vmem:[%s751_s3 + $0x8] sm:$0xff]  ;;  %s573_s22 = scalar_lea.vmem %s409_s21, 16  ;;  %p578_p1 = scmp.lt.s32.totalorder %s409_s21, %s409_s21 }
   0xb   :  { %532 = vmatprep.subr.bf16.mxu1 %v598_v5  ;;  %v548_v29 = vpack.c.bf16 %v140_v28, %v139_v27  ;;  %v551_v50 = vpack.c.bf16 %v225_v49, %v224_v48  ;;  %v226_v51 = vld [vmem:[%s751_s3 + $0x10] sm:$0xff]  ;;  %v227_v52 = vld [vmem:[%s751_s3 + $0x18] sm:$0xff]  ;;  %v228_v54 = vld [vmem:[%s751_s3 + $0x20] sm:$0xff]  ;;  %p574_p0 = scmp.ne.s32.totalorder %s409_s21, %s573_s22 }
   0xc   :  { %v554_v53 = vpack.c.bf16 %v227_v52, %v226_v51  ;;  %v229_v55 = vld [vmem:[%s751_s3 + $0x28] sm:$0xff]  ;;  %v230_v57 = vld [vmem:[%s751_s3 + $0x30] sm:$0xff]  ;;  %v231_v58 = vld [vmem:[%s751_s3 + $0x38] sm:$0xff] }
   0xd   :  { %552 = vmatpush3.bf16.msra.mxu0 %v551_v50  ;;  %v557_v56 = vpack.c.bf16 %v229_v55, %v228_v54  ;;  %v560_v59 = vpack.c.bf16 %v231_v58, %v230_v57  ;;  %v314_v12 = vld [vmem:[%s752_s4] sm:$0x1]  ;;  %s577_s4 = scalar_lea.vmem %s409_s21, 32 }
   0xe   :  { %534 = vmatpush3.bf16.msra.mxu1 %v533_v14  ;;  %553 = vmatprep.subr.bf16.mxu0 %v598_v5  ;;  %p579_p2 = scmp.lt.s32.totalorder %s577_s4, %s573_s22 }
   0xf   :  { %535 = vmatprep.subr.bf16.mxu1 %v598_v5 }
  0x10   :  { %p580_p3 = por %p579_p2, %p578_p1 }
  0x11   :  { %555 = vmatpush3.bf16.msra.mxu0 %v554_v53 }
  0x12   :  { %537 = vmatpush3.bf16.msra.mxu1 %v536_v17  ;;  %556 = vmatprep.subr.bf16.mxu0 %v598_v5  ;;  %p581_p4 = pnand %p580_p3, %p574_p0 }
  0x13   :  { %538 = vmatprep.subr.bf16.mxu1 %v598_v5 }
  0x15   :  { %558 = vmatpush3.bf16.msra.mxu0 %v557_v56 }
  0x16   :  { %540 = vmatpush3.bf16.msra.mxu1 %v539_v20  ;;  %559 = vmatprep.subr.bf16.mxu0 %v598_v5 }
  0x17   :  { %541 = vmatprep.subr.bf16.mxu1 %v598_v5 }
  0x19   :  { %561 = vmatpush3.bf16.msra.mxu0 %v560_v59 }
  0x1a   :  { %543 = vmatpush3.bf16.msra.mxu1 %v542_v23  ;;  %515 = vmatprep.subr.mxu0 %v600_v30 }
  0x1b   :  { %544 = vmatprep.subr.bf16.mxu1 %v598_v5 }
  0x1e   :  { %546 = vmatpush3.bf16.msra.mxu1 %v545_v26 }
  0x1f   :  { %547 = vmatprep.subr.bf16.mxu1 %v598_v5 }
  0x22   :  { %549 = vmatpush3.bf16.msra.mxu1 %v548_v29 }
  0xdb   :  { %v460_v31 = vpop.f32.mrb[0].mxu0 }
  0xdc   :  { %v112_v32 = vmax.f32 %v460_v31, 0.0  ;;  %v102_v33 = vpop.f32.mrb[1].mxu0 }
  0xdd   :  { %v111_v34 = vmax.f32 %v102_v33, 0.0 }
  0xde   :  { %v119_v35 = vrot.slane %v112_v32, 4 }
  0xdf   :  { %v113_v36 = vrot.slane %v111_v34, 4 }
  0xe0   :  { %v120_v37 = vadd.f32 %v119_v35, %v112_v32 }
  0xe1   :  { %v114_v38 = vadd.f32 %v113_v36, %v111_v34 }
  0xe2   :  { %v121_v39 = vrot.slane %v120_v37, 2 }
  0xe3   :  { %v115_v40 = vrot.slane %v114_v38, 2 }
  0xe4   :  { %v122_v41 = vadd.f32 %v121_v39, %v120_v37 }
  0xe5   :  { %v116_v42 = vadd.f32 %v115_v40, %v114_v38 }
  0xe6   :  { %v123_v43 = vrot.slane %v122_v41, 1 }
  0xe7   :  { %v117_v44 = vrot.slane %v116_v42, 1 }
  0xe8   :  { %v124_v45 = vadd.f32 %v123_v43, %v122_v41 }
  0xe9   :  { %v118_v46 = vadd.f32 %v117_v44, %v116_v42 }
  0xeb   :  { %v144_v47 = vsel %vm143_vm5, %v124_v45, %v118_v46 }
  0xec   :  { %494 = vmatmul.mubr.f32.vlgmr.msra.gmra.mrb[0].mxu1 %v144_v47 }
 0x1bf   :  { %v212_v60 = vpop.f32.mrb[0].mxu1 }
 0x1c0   :  { %v216_v61 = vmax.f32 %v212_v60, 1e-06  ;;  %v495_v62 = vpop.f32.mrb[1].mxu1 }
 0x1c2   :  { %567 = vrsqrt.f32 %v216_v61  ;;  %vm219_vm6 = vcmp.eq.f32.partialorder %v216_v61, inf  ;;  %v222_v1 = vand.u32 2147483648, %v216_v61  ;;  %vm221_vm8 = vcmp.eq.f32.partialorder %v216_v61, 0.0 }
 0x1cc   :  { %v568_v63 = vpop.eup %567 }
 0x1cd   :  { %v218_v0 = vmul.f32 %v568_v63, %v216_v61 }
 0x1cf   :  { %v220_v2 = vsel %vm219_vm6, %v216_v61, %v218_v0 }
 0x1d0   :  { %v223_v3 = vsel %vm221_vm8, %v222_v1, %v220_v2 }
 0x1d1   :  { %513 = vmatmul.mubr.msk.f32.vlgmr.msra.gmra.mrb[2].mxu0 %vm232_vm7, %v223_v3 }
 0x1d2   :  { %517 = vmatprep.mubr.msk.f32.mxu0 %vm599_vm4, %v600_v30 }
 0x2a4   :  { %v302_v4 = vpop.f32.mrb[2].mxu0 }
 0x2a5   :  { %v306_v6 = vmax.f32 %v302_v4, 1e-06  ;;  %v514_v5 = vpop.f32.mrb[3].mxu0 }
 0x2a7   :  { %569 = vrsqrt.f32 %v306_v6  ;;  %vm309_vm9 = vcmp.eq.f32.partialorder %v306_v6, inf  ;;  %v312_v9 = vand.u32 2147483648, %v306_v6  ;;  %vm311_vm11 = vcmp.eq.f32.partialorder %v306_v6, 0.0 }
 0x2b1   :  { %v570_v7 = vpop.eup %569 }
 0x2b2   :  { %v308_v8 = vmul.f32 %v570_v7, %v306_v6 }
 0x2b4   :  { %v310_v10 = vsel %vm309_vm9, %v306_v6, %v308_v8 }
 0x2b5   :  { %v313_v11 = vsel %vm311_vm11, %v312_v9, %v310_v10 }
 0x2b6   :  { %516 = vmatpush3.xpose.msk.msra.mxu0 %vm315_vm10, %v313_v11 }
 0x2b9   :  { %518 = vmatmul.mubr.msk.f32.vlgmr.msra.gmra.mrb[4].mxu0 %vm315_vm10, %v314_v12 }
 0x38c   :  { %v388_v13 = vpop.f32.mrb[4].mxu0 }
 0x38d   :  { %v392_v14 = vmax.f32 %v388_v13, 1e-06  ;;  %v519_v15 = vpop.f32.mrb[5].mxu0 }
 0x38f   :  { %571 = vrsqrt.f32 %v392_v14  ;;  %vm395_vm12 = vcmp.eq.f32.partialorder %v392_v14, inf  ;;  %v398_v18 = vand.u32 2147483648, %v392_v14  ;;  %vm397_vm14 = vcmp.eq.f32.partialorder %v392_v14, 0.0 }
 0x399   :  { %v572_v16 = vpop.eup %571 }
 0x39a   :  { %v394_v17 = vmul.f32 %v572_v16, %v392_v14 }
 0x39c   :  { %v396_v19 = vsel %vm395_vm12, %v392_v14, %v394_v17 }
 0x39d   :  { %v399_v20 = vsel %vm397_vm14, %v398_v18, %v396_v19 }
 0x39e   :  { %401 = vst.msk [vmem:[#allocation2] sm:$0x1] %vm400_vm13, %v399_v20 }
 0x39f   :  { %584 = shalt.err (!%p581_p4)
}
 0x3a0   :  { %s585_s25 = scalar_lea.hbm %s753_s5, 16 }
 0x3a1   :  { %p586_p5 = scmp.ne.s32.totalorder %s753_s5, %s585_s25  ;;  %p589_p6 = scmp.lt.u32.totalorder %s585_s25, %s753_s5 }
 0x3a3   :  { %p591_p7 = pnand %p589_p6, %p586_p5 }
 0x3a5   :  { %594 = shalt.err (!%p591_p7)
}
 0x3a6   :  { %411 = dma.vmem_to_hbm [thread:$0]  %s409_s21, 16, %s753_s5, [#allocation3]  }
 0x3a7   :  { %595 = dma.done.wait [#allocation3], 16  }
 0x3a8   :  { %596 = vsyncadd [#allocation3], 4294967280 }
 0x3a9   :  { %415 = vsyncpa [#allocation3], 1 }

</bundles_post_ra>
